<compile_context>
chip_gen: v7x
topology: tpu7x:2x2x1
jax: 0.10.0
libtpu: 0.0.40
codegen_flags: <defaults>
</compile_context>

<pallas_src>
import math
import functools

import jax
import jax.numpy as jnp
from jax.experimental import pallas as pl
from jax.experimental.pallas import tpu as pltpu


def _round_up(a, m):
    return (a + m - 1) // m * m


def _sactor_kernel(x_ref, w_ref, o_ref, *, input_size, hidden_size, output_size):
    """One batch tile (batch on lanes) of sActor.forward.

    x_ref: (input_size, TB)    input rows, batch-last
    w_ref: (w_dim, TB)         per-sample flattened layer weights, batch-last
    o_ref: (output_size, TB)   output rows, batch-last
    """
    iw1 = (input_size + 1) * hidden_size
    iw2 = iw1 + (hidden_size + 1) * hidden_size

    def layer(inp, base, d_in, d_out):
        # w_ref[base : base + (d_in+1)*d_out, :] is this layer's (d_in+1, d_out)
        # matrix per sample (batch on lanes); row-block 0 is the bias rows
        # (the cat-with-ones trick).  All slices are static sublane slices.
        acc = w_ref[base:base + d_out, :]                        # (d_out, TB)
        for d in range(d_in):                                    # unrolled VPU FMAs
            lo = base + (d + 1) * d_out
            acc = acc + inp[d:d + 1, :] * w_ref[lo:lo + d_out, :]
        return acc

    x = x_ref[...]                                               # (input_size, TB)
    h1 = jnp.tanh(layer(x, 0, input_size, hidden_size))
    h2 = jnp.tanh(layer(h1, iw1, hidden_size, hidden_size))
    o_ref[...] = layer(h2, iw2, hidden_size, output_size)        # no final activation


@functools.partial(
    jax.jit,
    static_argnames=("input_size", "hidden_size", "output_size", "tile_b"),
)
def sactor_forward(x, w_t, *, input_size, hidden_size, output_size, tile_b=2048):
    """x: (B, input_size) f32.  w_t: (w_dim, B) f32 per-sample hyper-weights
    stored batch-last (== self.w.T); returns (B, output_size)."""
    B = x.shape[0]
    w_dim = ((input_size + 1) * hidden_size
             + (hidden_size + 1) * hidden_size
             + (hidden_size + 1) * output_size)
    assert w_t.shape == (w_dim, B)

    # Batch tile on the lane axis: either the full (small) batch, or a
    # multiple of 128 chosen so that the grid has >=2 steps when possible.
    LANE = 128
    if B <= LANE:
        tb = B                                   # single block == full array dim
    else:
        tb = min(tile_b, _round_up(-(-B // 2), LANE))
        tb = max(tb, LANE)
    grid = (pl.cdiv(B, tb),)                     # ragged last block is masked

    x_t = x.T                                    # tiny (input_size, B) transpose

    kernel = functools.partial(
        _sactor_kernel,
        input_size=input_size,
        hidden_size=hidden_size,
        output_size=output_size,
    )

    out_t = pl.pallas_call(
        kernel,
        out_shape=jax.ShapeDtypeStruct((output_size, B), jnp.float32),
        grid=grid,
        in_specs=[
            pl.BlockSpec((input_size, tb), lambda i: (0, i)),
            pl.BlockSpec((w_dim, tb), lambda i: (0, i)),
        ],
        out_specs=pl.BlockSpec((output_size, tb), lambda i: (0, i)),
        compiler_params=pltpu.CompilerParams(
            dimension_semantics=("parallel",),
            vmem_limit_bytes=48 * 1024 * 1024,
        ),
    )(x_t, w_t)
    return out_t.T                               # tiny (B, output_size) transpose


# ----------------------------------------------------------------------------
# Setup (outside forward()): the hyper-network generate/decode that produces
# self.w, implemented in plain JAX since sActor.forward only consumes self.w.
# ----------------------------------------------------------------------------
def make_generator_params(key, z_dim, w_dim):
    sizes = [(z_dim, 32), (32, 64), (64, 128), (128, w_dim)]
    keys = jax.random.split(key, len(sizes))
    gain = math.sqrt(2.0)
    params = []
    for k, (d_in, d_out) in zip(keys, sizes):
        # nn.init.orthogonal_ on a (out, in) weight; forward is x @ W.T + b.
        wt = jax.nn.initializers.orthogonal(scale=gain)(k, (d_out, d_in), jnp.float32)
        params.append((wt.T, jnp.zeros((d_out,), jnp.float32)))
    return params


def decode(z, gen_params):
    """sActor.decode: relu, relu, relu, tanh -> (B, out_dim)."""
    h = z
    last = len(gen_params) - 1
    for i, (wm, b) in enumerate(gen_params):
        h = h @ wm + b
        h = jnp.tanh(h) if i == last else jax.nn.relu(h)
    return h


def sactor_forward_ref(x, w, input_size, hidden_size, output_size):
    """Pure-JAX reference of sActor.forward (w in the original (B, w_dim) layout)."""
    B = x.shape[0]
    iw1 = (input_size + 1) * hidden_size
    iw2 = iw1 + (hidden_size + 1) * hidden_size
    iw3 = iw2 + (hidden_size + 1) * output_size

    def layer(inp, wflat, d_in, d_out):
        wm = wflat.reshape(B, d_in + 1, d_out)
        xin = jnp.concatenate([jnp.ones((B, 1), inp.dtype), inp], axis=-1)
        return jnp.einsum("bd,bdo->bo", xin, wm)

    h1 = jnp.tanh(layer(x, w[:, :iw1], input_size, hidden_size))
    h2 = jnp.tanh(layer(h1, w[:, iw1:iw2], hidden_size, hidden_size))
    return layer(h2, w[:, iw2:iw3], hidden_size, output_size)


if __name__ == "__main__":
    key = jax.random.PRNGKey(0)
    k_gen, k_z1, k_x1, k_z2, k_x2 = jax.random.split(key, 5)

    input_size, output_size, hidden_size, z_dim = 8, 4, 16, 8
    w_dim = ((input_size + 1) * hidden_size
             + (hidden_size + 1) * hidden_size
             + (hidden_size + 1) * output_size)

    gen_params = make_generator_params(k_gen, z_dim, w_dim)

    def run_case(kz, kx, batch, tile_b=2048):
        z = jax.random.normal(kz, (batch, z_dim), dtype=jnp.float32)
        w = decode(z, gen_params)[:, :w_dim]      # == sActor.generate(z) setting self.w
        w_t = w.T                                 # generate() stores weights batch-last
        x = jax.random.normal(kx, (batch, input_size), dtype=jnp.float32)

        out = sactor_forward(
            x, w_t,
            input_size=input_size,
            hidden_size=hidden_size,
            output_size=output_size,
            tile_b=tile_b,
        )
        out = jax.block_until_ready(out)

        ref = sactor_forward_ref(x, w, input_size, hidden_size, output_size)
        assert out.shape == (batch, output_size)
        assert jnp.allclose(out, ref, atol=1e-5, rtol=1e-5), "mismatch vs reference"

    # Small batch: single full-batch block (lane dim == full array dim).
    run_case(k_z1, k_x1, batch=10)
    # Larger batch: multi-step grid (2 steps) with a ragged, masked last block.
    run_case(k_z2, k_x2, batch=300)

    print("KERNEL_OK")
</pallas_src>

<mosaic_0001>
module attributes {stable_mosaic.version = 11 : i64} {
  func.func @_sactor_kernel(%arg0: i32, %arg1: memref<8x10xf32, #tpu.memory_space<vmem>>, %arg2: memref<484x10xf32, #tpu.memory_space<vmem>>, %arg3: memref<4x10xf32, #tpu.memory_space<vmem>>) attributes {dimension_semantics = [#tpu.dimension_semantics<parallel>], iteration_bounds = array<i64: 1>, scalar_prefetch = 0 : i64, scratch_operands = 0 : i64, tpu.core_type = #tpu.core_type<tc>, window_params = [{transform_indices = @transform_0, window_bounds = array<i64: 8, 10>}, {transform_indices = @transform_1, window_bounds = array<i64: 484, 10>}, {transform_indices = @transform_2, window_bounds = array<i64: 4, 10>}]} {
    %c0 = arith.constant 0 : index
    %c0_0 = arith.constant 0 : index
    %0 = vector.load %arg1[%c0, %c0_0] : memref<8x10xf32, #tpu.memory_space<vmem>>, vector<8x10xf32>
    %c0_1 = arith.constant 0 : index
    %c0_2 = arith.constant 0 : index
    %1 = vector.load %arg2[%c0_1, %c0_2] : memref<484x10xf32, #tpu.memory_space<vmem>>, vector<16x10xf32>
    %2 = vector.extract_strided_slice %0 {offsets = [0, 0], sizes = [1, 10], strides = [1, 1]} : vector<8x10xf32> to vector<1x10xf32>
    %c16 = arith.constant 16 : index
    %c0_3 = arith.constant 0 : index
    %3 = vector.load %arg2[%c16, %c0_3] : memref<484x10xf32, #tpu.memory_space<vmem>>, vector<16x10xf32>
    %4 = vector.broadcast %2 : vector<1x10xf32> to vector<16x10xf32>
    %5 = arith.mulf %4, %3 : vector<16x10xf32>
    %6 = arith.addf %1, %5 : vector<16x10xf32>
    %7 = vector.extract_strided_slice %0 {offsets = [1, 0], sizes = [1, 10], strides = [1, 1]} : vector<8x10xf32> to vector<1x10xf32>
    %c32 = arith.constant 32 : index
    %c0_4 = arith.constant 0 : index
    %8 = vector.load %arg2[%c32, %c0_4] : memref<484x10xf32, #tpu.memory_space<vmem>>, vector<16x10xf32>
    %9 = vector.broadcast %7 : vector<1x10xf32> to vector<16x10xf32>
    %10 = arith.mulf %9, %8 : vector<16x10xf32>
    %11 = arith.addf %6, %10 : vector<16x10xf32>
    %12 = vector.extract_strided_slice %0 {offsets = [2, 0], sizes = [1, 10], strides = [1, 1]} : vector<8x10xf32> to vector<1x10xf32>
    %c48 = arith.constant 48 : index
    %c0_5 = arith.constant 0 : index
    %13 = vector.load %arg2[%c48, %c0_5] : memref<484x10xf32, #tpu.memory_space<vmem>>, vector<16x10xf32>
    %14 = vector.broadcast %12 : vector<1x10xf32> to vector<16x10xf32>
    %15 = arith.mulf %14, %13 : vector<16x10xf32>
    %16 = arith.addf %11, %15 : vector<16x10xf32>
    %17 = vector.extract_strided_slice %0 {offsets = [3, 0], sizes = [1, 10], strides = [1, 1]} : vector<8x10xf32> to vector<1x10xf32>
    %c64 = arith.constant 64 : index
    %c0_6 = arith.constant 0 : index
    %18 = vector.load %arg2[%c64, %c0_6] : memref<484x10xf32, #tpu.memory_space<vmem>>, vector<16x10xf32>
    %19 = vector.broadcast %17 : vector<1x10xf32> to vector<16x10xf32>
    %20 = arith.mulf %19, %18 : vector<16x10xf32>
    %21 = arith.addf %16, %20 : vector<16x10xf32>
    %22 = vector.extract_strided_slice %0 {offsets = [4, 0], sizes = [1, 10], strides = [1, 1]} : vector<8x10xf32> to vector<1x10xf32>
    %c80 = arith.constant 80 : index
    %c0_7 = arith.constant 0 : index
    %23 = vector.load %arg2[%c80, %c0_7] : memref<484x10xf32, #tpu.memory_space<vmem>>, vector<16x10xf32>
    %24 = vector.broadcast %22 : vector<1x10xf32> to vector<16x10xf32>
    %25 = arith.mulf %24, %23 : vector<16x10xf32>
    %26 = arith.addf %21, %25 : vector<16x10xf32>
    %27 = vector.extract_strided_slice %0 {offsets = [5, 0], sizes = [1, 10], strides = [1, 1]} : vector<8x10xf32> to vector<1x10xf32>
    %c96 = arith.constant 96 : index
    %c0_8 = arith.constant 0 : index
    %28 = vector.load %arg2[%c96, %c0_8] : memref<484x10xf32, #tpu.memory_space<vmem>>, vector<16x10xf32>
    %29 = vector.broadcast %27 : vector<1x10xf32> to vector<16x10xf32>
    %30 = arith.mulf %29, %28 : vector<16x10xf32>
    %31 = arith.addf %26, %30 : vector<16x10xf32>
    %32 = vector.extract_strided_slice %0 {offsets = [6, 0], sizes = [1, 10], strides = [1, 1]} : vector<8x10xf32> to vector<1x10xf32>
    %c112 = arith.constant 112 : index
    %c0_9 = arith.constant 0 : index
    %33 = vector.load %arg2[%c112, %c0_9] : memref<484x10xf32, #tpu.memory_space<vmem>>, vector<16x10xf32>
    %34 = vector.broadcast %32 : vector<1x10xf32> to vector<16x10xf32>
    %35 = arith.mulf %34, %33 : vector<16x10xf32>
    %36 = arith.addf %31, %35 : vector<16x10xf32>
    %37 = vector.extract_strided_slice %0 {offsets = [7, 0], sizes = [1, 10], strides = [1, 1]} : vector<8x10xf32> to vector<1x10xf32>
    %c128 = arith.constant 128 : index
    %c0_10 = arith.constant 0 : index
    %38 = vector.load %arg2[%c128, %c0_10] : memref<484x10xf32, #tpu.memory_space<vmem>>, vector<16x10xf32>
    %39 = vector.broadcast %37 : vector<1x10xf32> to vector<16x10xf32>
    %40 = arith.mulf %39, %38 : vector<16x10xf32>
    %41 = arith.addf %36, %40 : vector<16x10xf32>
    %42 = math.tanh %41 : vector<16x10xf32>
    %c144 = arith.constant 144 : index
    %c0_11 = arith.constant 0 : index
    %43 = vector.load %arg2[%c144, %c0_11] : memref<484x10xf32, #tpu.memory_space<vmem>>, vector<16x10xf32>
    %44 = vector.extract_strided_slice %42 {offsets = [0, 0], sizes = [1, 10], strides = [1, 1]} : vector<16x10xf32> to vector<1x10xf32>
    %c160 = arith.constant 160 : index
    %c0_12 = arith.constant 0 : index
    %45 = vector.load %arg2[%c160, %c0_12] : memref<484x10xf32, #tpu.memory_space<vmem>>, vector<16x10xf32>
    %46 = vector.broadcast %44 : vector<1x10xf32> to vector<16x10xf32>
    %47 = arith.mulf %46, %45 : vector<16x10xf32>
    %48 = arith.addf %43, %47 : vector<16x10xf32>
    %49 = vector.extract_strided_slice %42 {offsets = [1, 0], sizes = [1, 10], strides = [1, 1]} : vector<16x10xf32> to vector<1x10xf32>
    %c176 = arith.constant 176 : index
    %c0_13 = arith.constant 0 : index
    %50 = vector.load %arg2[%c176, %c0_13] : memref<484x10xf32, #tpu.memory_space<vmem>>, vector<16x10xf32>
    %51 = vector.broadcast %49 : vector<1x10xf32> to vector<16x10xf32>
    %52 = arith.mulf %51, %50 : vector<16x10xf32>
    %53 = arith.addf %48, %52 : vector<16x10xf32>
    %54 = vector.extract_strided_slice %42 {offsets = [2, 0], sizes = [1, 10], strides = [1, 1]} : vector<16x10xf32> to vector<1x10xf32>
    %c192 = arith.constant 192 : index
    %c0_14 = arith.constant 0 : index
    %55 = vector.load %arg2[%c192, %c0_14] : memref<484x10xf32, #tpu.memory_space<vmem>>, vector<16x10xf32>
    %56 = vector.broadcast %54 : vector<1x10xf32> to vector<16x10xf32>
    %57 = arith.mulf %56, %55 : vector<16x10xf32>
    %58 = arith.addf %53, %57 : vector<16x10xf32>
    %59 = vector.extract_strided_slice %42 {offsets = [3, 0], sizes = [1, 10], strides = [1, 1]} : vector<16x10xf32> to vector<1x10xf32>
    %c208 = arith.constant 208 : index
    %c0_15 = arith.constant 0 : index
    %60 = vector.load %arg2[%c208, %c0_15] : memref<484x10xf32, #tpu.memory_space<vmem>>, vector<16x10xf32>
    %61 = vector.broadcast %59 : vector<1x10xf32> to vector<16x10xf32>
    %62 = arith.mulf %61, %60 : vector<16x10xf32>
    %63 = arith.addf %58, %62 : vector<16x10xf32>
    %64 = vector.extract_strided_slice %42 {offsets = [4, 0], sizes = [1, 10], strides = [1, 1]} : vector<16x10xf32> to vector<1x10xf32>
    %c224 = arith.constant 224 : index
    %c0_16 = arith.constant 0 : index
    %65 = vector.load %arg2[%c224, %c0_16] : memref<484x10xf32, #tpu.memory_space<vmem>>, vector<16x10xf32>
    %66 = vector.broadcast %64 : vector<1x10xf32> to vector<16x10xf32>
    %67 = arith.mulf %66, %65 : vector<16x10xf32>
    %68 = arith.addf %63, %67 : vector<16x10xf32>
    %69 = vector.extract_strided_slice %42 {offsets = [5, 0], sizes = [1, 10], strides = [1, 1]} : vector<16x10xf32> to vector<1x10xf32>
    %c240 = arith.constant 240 : index
    %c0_17 = arith.constant 0 : index
    %70 = vector.load %arg2[%c240, %c0_17] : memref<484x10xf32, #tpu.memory_space<vmem>>, vector<16x10xf32>
    %71 = vector.broadcast %69 : vector<1x10xf32> to vector<16x10xf32>
    %72 = arith.mulf %71, %70 : vector<16x10xf32>
    %73 = arith.addf %68, %72 : vector<16x10xf32>
    %74 = vector.extract_strided_slice %42 {offsets = [6, 0], sizes = [1, 10], strides = [1, 1]} : vector<16x10xf32> to vector<1x10xf32>
    %c256 = arith.constant 256 : index
    %c0_18 = arith.constant 0 : index
    %75 = vector.load %arg2[%c256, %c0_18] : memref<484x10xf32, #tpu.memory_space<vmem>>, vector<16x10xf32>
    %76 = vector.broadcast %74 : vector<1x10xf32> to vector<16x10xf32>
    %77 = arith.mulf %76, %75 : vector<16x10xf32>
    %78 = arith.addf %73, %77 : vector<16x10xf32>
    %79 = vector.extract_strided_slice %42 {offsets = [7, 0], sizes = [1, 10], strides = [1, 1]} : vector<16x10xf32> to vector<1x10xf32>
    %c272 = arith.constant 272 : index
    %c0_19 = arith.constant 0 : index
    %80 = vector.load %arg2[%c272, %c0_19] : memref<484x10xf32, #tpu.memory_space<vmem>>, vector<16x10xf32>
    %81 = vector.broadcast %79 : vector<1x10xf32> to vector<16x10xf32>
    %82 = arith.mulf %81, %80 : vector<16x10xf32>
    %83 = arith.addf %78, %82 : vector<16x10xf32>
    %84 = vector.extract_strided_slice %42 {offsets = [8, 0], sizes = [1, 10], strides = [1, 1]} : vector<16x10xf32> to vector<1x10xf32>
    %c288 = arith.constant 288 : index
    %c0_20 = arith.constant 0 : index
    %85 = vector.load %arg2[%c288, %c0_20] : memref<484x10xf32, #tpu.memory_space<vmem>>, vector<16x10xf32>
    %86 = vector.broadcast %84 : vector<1x10xf32> to vector<16x10xf32>
    %87 = arith.mulf %86, %85 : vector<16x10xf32>
    %88 = arith.addf %83, %87 : vector<16x10xf32>
    %89 = vector.extract_strided_slice %42 {offsets = [9, 0], sizes = [1, 10], strides = [1, 1]} : vector<16x10xf32> to vector<1x10xf32>
    %c304 = arith.constant 304 : index
    %c0_21 = arith.constant 0 : index
    %90 = vector.load %arg2[%c304, %c0_21] : memref<484x10xf32, #tpu.memory_space<vmem>>, vector<16x10xf32>
    %91 = vector.broadcast %89 : vector<1x10xf32> to vector<16x10xf32>
    %92 = arith.mulf %91, %90 : vector<16x10xf32>
    %93 = arith.addf %88, %92 : vector<16x10xf32>
    %94 = vector.extract_strided_slice %42 {offsets = [10, 0], sizes = [1, 10], strides = [1, 1]} : vector<16x10xf32> to vector<1x10xf32>
    %c320 = arith.constant 320 : index
    %c0_22 = arith.constant 0 : index
    %95 = vector.load %arg2[%c320, %c0_22] : memref<484x10xf32, #tpu.memory_space<vmem>>, vector<16x10xf32>
    %96 = vector.broadcast %94 : vector<1x10xf32> to vector<16x10xf32>
    %97 = arith.mulf %96, %95 : vector<16x10xf32>
    %98 = arith.addf %93, %97 : vector<16x10xf32>
    %99 = vector.extract_strided_slice %42 {offsets = [11, 0], sizes = [1, 10], strides = [1, 1]} : vector<16x10xf32> to vector<1x10xf32>
    %c336 = arith.constant 336 : index
    %c0_23 = arith.constant 0 : index
    %100 = vector.load %arg2[%c336, %c0_23] : memref<484x10xf32, #tpu.memory_space<vmem>>, vector<16x10xf32>
    %101 = vector.broadcast %99 : vector<1x10xf32> to vector<16x10xf32>
    %102 = arith.mulf %101, %100 : vector<16x10xf32>
    %103 = arith.addf %98, %102 : vector<16x10xf32>
    %104 = vector.extract_strided_slice %42 {offsets = [12, 0], sizes = [1, 10], strides = [1, 1]} : vector<16x10xf32> to vector<1x10xf32>
    %c352 = arith.constant 352 : index
    %c0_24 = arith.constant 0 : index
    %105 = vector.load %arg2[%c352, %c0_24] : memref<484x10xf32, #tpu.memory_space<vmem>>, vector<16x10xf32>
    %106 = vector.broadcast %104 : vector<1x10xf32> to vector<16x10xf32>
    %107 = arith.mulf %106, %105 : vector<16x10xf32>
    %108 = arith.addf %103, %107 : vector<16x10xf32>
    %109 = vector.extract_strided_slice %42 {offsets = [13, 0], sizes = [1, 10], strides = [1, 1]} : vector<16x10xf32> to vector<1x10xf32>
    %c368 = arith.constant 368 : index
    %c0_25 = arith.constant 0 : index
    %110 = vector.load %arg2[%c368, %c0_25] : memref<484x10xf32, #tpu.memory_space<vmem>>, vector<16x10xf32>
    %111 = vector.broadcast %109 : vector<1x10xf32> to vector<16x10xf32>
    %112 = arith.mulf %111, %110 : vector<16x10xf32>
    %113 = arith.addf %108, %112 : vector<16x10xf32>
    %114 = vector.extract_strided_slice %42 {offsets = [14, 0], sizes = [1, 10], strides = [1, 1]} : vector<16x10xf32> to vector<1x10xf32>
    %c384 = arith.constant 384 : index
    %c0_26 = arith.constant 0 : index
    %115 = vector.load %arg2[%c384, %c0_26] : memref<484x10xf32, #tpu.memory_space<vmem>>, vector<16x10xf32>
    %116 = vector.broadcast %114 : vector<1x10xf32> to vector<16x10xf32>
    %117 = arith.mulf %116, %115 : vector<16x10xf32>
    %118 = arith.addf %113, %117 : vector<16x10xf32>
    %119 = vector.extract_strided_slice %42 {offsets = [15, 0], sizes = [1, 10], strides = [1, 1]} : vector<16x10xf32> to vector<1x10xf32>
    %c400 = arith.constant 400 : index
    %c0_27 = arith.constant 0 : index
    %120 = vector.load %arg2[%c400, %c0_27] : memref<484x10xf32, #tpu.memory_space<vmem>>, vector<16x10xf32>
    %121 = vector.broadcast %119 : vector<1x10xf32> to vector<16x10xf32>
    %122 = arith.mulf %121, %120 : vector<16x10xf32>
    %123 = arith.addf %118, %122 : vector<16x10xf32>
    %124 = math.tanh %123 : vector<16x10xf32>
    %c416 = arith.constant 416 : index
    %c0_28 = arith.constant 0 : index
    %125 = vector.load %arg2[%c416, %c0_28] : memref<484x10xf32, #tpu.memory_space<vmem>>, vector<4x10xf32>
    %126 = vector.extract_strided_slice %124 {offsets = [0, 0], sizes = [1, 10], strides = [1, 1]} : vector<16x10xf32> to vector<1x10xf32>
    %c420 = arith.constant 420 : index
    %c0_29 = arith.constant 0 : index
    %127 = vector.load %arg2[%c420, %c0_29] : memref<484x10xf32, #tpu.memory_space<vmem>>, vector<4x10xf32>
    %128 = vector.broadcast %126 : vector<1x10xf32> to vector<4x10xf32>
    %129 = arith.mulf %128, %127 : vector<4x10xf32>
    %130 = arith.addf %125, %129 : vector<4x10xf32>
    %131 = vector.extract_strided_slice %124 {offsets = [1, 0], sizes = [1, 10], strides = [1, 1]} : vector<16x10xf32> to vector<1x10xf32>
    %c424 = arith.constant 424 : index
    %c0_30 = arith.constant 0 : index
    %132 = vector.load %arg2[%c424, %c0_30] : memref<484x10xf32, #tpu.memory_space<vmem>>, vector<4x10xf32>
    %133 = vector.broadcast %131 : vector<1x10xf32> to vector<4x10xf32>
    %134 = arith.mulf %133, %132 : vector<4x10xf32>
    %135 = arith.addf %130, %134 : vector<4x10xf32>
    %136 = vector.extract_strided_slice %124 {offsets = [2, 0], sizes = [1, 10], strides = [1, 1]} : vector<16x10xf32> to vector<1x10xf32>
    %c428 = arith.constant 428 : index
    %c0_31 = arith.constant 0 : index
    %137 = vector.load %arg2[%c428, %c0_31] : memref<484x10xf32, #tpu.memory_space<vmem>>, vector<4x10xf32>
    %138 = vector.broadcast %136 : vector<1x10xf32> to vector<4x10xf32>
    %139 = arith.mulf %138, %137 : vector<4x10xf32>
    %140 = arith.addf %135, %139 : vector<4x10xf32>
    %141 = vector.extract_strided_slice %124 {offsets = [3, 0], sizes = [1, 10], strides = [1, 1]} : vector<16x10xf32> to vector<1x10xf32>
    %c432 = arith.constant 432 : index
    %c0_32 = arith.constant 0 : index
    %142 = vector.load %arg2[%c432, %c0_32] : memref<484x10xf32, #tpu.memory_space<vmem>>, vector<4x10xf32>
    %143 = vector.broadcast %141 : vector<1x10xf32> to vector<4x10xf32>
    %144 = arith.mulf %143, %142 : vector<4x10xf32>
    %145 = arith.addf %140, %144 : vector<4x10xf32>
    %146 = vector.extract_strided_slice %124 {offsets = [4, 0], sizes = [1, 10], strides = [1, 1]} : vector<16x10xf32> to vector<1x10xf32>
    %c436 = arith.constant 436 : index
    %c0_33 = arith.constant 0 : index
    %147 = vector.load %arg2[%c436, %c0_33] : memref<484x10xf32, #tpu.memory_space<vmem>>, vector<4x10xf32>
    %148 = vector.broadcast %146 : vector<1x10xf32> to vector<4x10xf32>
    %149 = arith.mulf %148, %147 : vector<4x10xf32>
    %150 = arith.addf %145, %149 : vector<4x10xf32>
    %151 = vector.extract_strided_slice %124 {offsets = [5, 0], sizes = [1, 10], strides = [1, 1]} : vector<16x10xf32> to vector<1x10xf32>
    %c440 = arith.constant 440 : index
    %c0_34 = arith.constant 0 : index
    %152 = vector.load %arg2[%c440, %c0_34] : memref<484x10xf32, #tpu.memory_space<vmem>>, vector<4x10xf32>
    %153 = vector.broadcast %151 : vector<1x10xf32> to vector<4x10xf32>
    %154 = arith.mulf %153, %152 : vector<4x10xf32>
    %155 = arith.addf %150, %154 : vector<4x10xf32>
    %156 = vector.extract_strided_slice %124 {offsets = [6, 0], sizes = [1, 10], strides = [1, 1]} : vector<16x10xf32> to vector<1x10xf32>
    %c444 = arith.constant 444 : index
    %c0_35 = arith.constant 0 : index
    %157 = vector.load %arg2[%c444, %c0_35] : memref<484x10xf32, #tpu.memory_space<vmem>>, vector<4x10xf32>
    %158 = vector.broadcast %156 : vector<1x10xf32> to vector<4x10xf32>
    %159 = arith.mulf %158, %157 : vector<4x10xf32>
    %160 = arith.addf %155, %159 : vector<4x10xf32>
    %161 = vector.extract_strided_slice %124 {offsets = [7, 0], sizes = [1, 10], strides = [1, 1]} : vector<16x10xf32> to vector<1x10xf32>
    %c448 = arith.constant 448 : index
    %c0_36 = arith.constant 0 : index
    %162 = vector.load %arg2[%c448, %c0_36] : memref<484x10xf32, #tpu.memory_space<vmem>>, vector<4x10xf32>
    %163 = vector.broadcast %161 : vector<1x10xf32> to vector<4x10xf32>
    %164 = arith.mulf %163, %162 : vector<4x10xf32>
    %165 = arith.addf %160, %164 : vector<4x10xf32>
    %166 = vector.extract_strided_slice %124 {offsets = [8, 0], sizes = [1, 10], strides = [1, 1]} : vector<16x10xf32> to vector<1x10xf32>
    %c452 = arith.constant 452 : index
    %c0_37 = arith.constant 0 : index
    %167 = vector.load %arg2[%c452, %c0_37] : memref<484x10xf32, #tpu.memory_space<vmem>>, vector<4x10xf32>
    %168 = vector.broadcast %166 : vector<1x10xf32> to vector<4x10xf32>
    %169 = arith.mulf %168, %167 : vector<4x10xf32>
    %170 = arith.addf %165, %169 : vector<4x10xf32>
    %171 = vector.extract_strided_slice %124 {offsets = [9, 0], sizes = [1, 10], strides = [1, 1]} : vector<16x10xf32> to vector<1x10xf32>
    %c456 = arith.constant 456 : index
    %c0_38 = arith.constant 0 : index
    %172 = vector.load %arg2[%c456, %c0_38] : memref<484x10xf32, #tpu.memory_space<vmem>>, vector<4x10xf32>
    %173 = vector.broadcast %171 : vector<1x10xf32> to vector<4x10xf32>
    %174 = arith.mulf %173, %172 : vector<4x10xf32>
    %175 = arith.addf %170, %174 : vector<4x10xf32>
    %176 = vector.extract_strided_slice %124 {offsets = [10, 0], sizes = [1, 10], strides = [1, 1]} : vector<16x10xf32> to vector<1x10xf32>
    %c460 = arith.constant 460 : index
    %c0_39 = arith.constant 0 : index
    %177 = vector.load %arg2[%c460, %c0_39] : memref<484x10xf32, #tpu.memory_space<vmem>>, vector<4x10xf32>
    %178 = vector.broadcast %176 : vector<1x10xf32> to vector<4x10xf32>
    %179 = arith.mulf %178, %177 : vector<4x10xf32>
    %180 = arith.addf %175, %179 : vector<4x10xf32>
    %181 = vector.extract_strided_slice %124 {offsets = [11, 0], sizes = [1, 10], strides = [1, 1]} : vector<16x10xf32> to vector<1x10xf32>
    %c464 = arith.constant 464 : index
    %c0_40 = arith.constant 0 : index
    %182 = vector.load %arg2[%c464, %c0_40] : memref<484x10xf32, #tpu.memory_space<vmem>>, vector<4x10xf32>
    %183 = vector.broadcast %181 : vector<1x10xf32> to vector<4x10xf32>
    %184 = arith.mulf %183, %182 : vector<4x10xf32>
    %185 = arith.addf %180, %184 : vector<4x10xf32>
    %186 = vector.extract_strided_slice %124 {offsets = [12, 0], sizes = [1, 10], strides = [1, 1]} : vector<16x10xf32> to vector<1x10xf32>
    %c468 = arith.constant 468 : index
    %c0_41 = arith.constant 0 : index
    %187 = vector.load %arg2[%c468, %c0_41] : memref<484x10xf32, #tpu.memory_space<vmem>>, vector<4x10xf32>
    %188 = vector.broadcast %186 : vector<1x10xf32> to vector<4x10xf32>
    %189 = arith.mulf %188, %187 : vector<4x10xf32>
    %190 = arith.addf %185, %189 : vector<4x10xf32>
    %191 = vector.extract_strided_slice %124 {offsets = [13, 0], sizes = [1, 10], strides = [1, 1]} : vector<16x10xf32> to vector<1x10xf32>
    %c472 = arith.constant 472 : index
    %c0_42 = arith.constant 0 : index
    %192 = vector.load %arg2[%c472, %c0_42] : memref<484x10xf32, #tpu.memory_space<vmem>>, vector<4x10xf32>
    %193 = vector.broadcast %191 : vector<1x10xf32> to vector<4x10xf32>
    %194 = arith.mulf %193, %192 : vector<4x10xf32>
    %195 = arith.addf %190, %194 : vector<4x10xf32>
    %196 = vector.extract_strided_slice %124 {offsets = [14, 0], sizes = [1, 10], strides = [1, 1]} : vector<16x10xf32> to vector<1x10xf32>
    %c476 = arith.constant 476 : index
    %c0_43 = arith.constant 0 : index
    %197 = vector.load %arg2[%c476, %c0_43] : memref<484x10xf32, #tpu.memory_space<vmem>>, vector<4x10xf32>
    %198 = vector.broadcast %196 : vector<1x10xf32> to vector<4x10xf32>
    %199 = arith.mulf %198, %197 : vector<4x10xf32>
    %200 = arith.addf %195, %199 : vector<4x10xf32>
    %201 = vector.extract_strided_slice %124 {offsets = [15, 0], sizes = [1, 10], strides = [1, 1]} : vector<16x10xf32> to vector<1x10xf32>
    %c480 = arith.constant 480 : index
    %c0_44 = arith.constant 0 : index
    %202 = vector.load %arg2[%c480, %c0_44] : memref<484x10xf32, #tpu.memory_space<vmem>>, vector<4x10xf32>
    %203 = vector.broadcast %201 : vector<1x10xf32> to vector<4x10xf32>
    %204 = arith.mulf %203, %202 : vector<4x10xf32>
    %205 = arith.addf %200, %204 : vector<4x10xf32>
    %c0_45 = arith.constant 0 : index
    %c0_46 = arith.constant 0 : index
    %206 = vector.load %arg3[%c0_45, %c0_46] : memref<4x10xf32, #tpu.memory_space<vmem>>, vector<4x10xf32>
    tpu.vector_store %arg3[%c0_45, %c0_46], %205 {strides = array<i32>} : memref<4x10xf32, #tpu.memory_space<vmem>>, vector<4x10xf32>,
    return
  }
  func.func @transform_0(%arg0: i32) -> (i32, i32) {
    %c0_i32 = arith.constant 0 : i32
    %c0_i32_0 = arith.constant 0 : i32
    return %c0_i32, %arg0 : i32, i32
  }
  func.func @transform_1(%arg0: i32) -> (i32, i32) {
    %c0_i32 = arith.constant 0 : i32
    %c0_i32_0 = arith.constant 0 : i32
    return %c0_i32, %arg0 : i32, i32
  }
  func.func @transform_2(%arg0: i32) -> (i32, i32) {
    %c0_i32 = arith.constant 0 : i32
    %c0_i32_0 = arith.constant 0 : i32
    return %c0_i32, %arg0 : i32, i32
  }
}

</mosaic_0001>

<bundles_post_ra>
// kernel: sactor_forward.1
= control target key start
LH: loop header
LB: loop body
LE: loop exit
PB: predicated region body
PF: predicated region fallthrough
CT: control target
= control target key end

     0   :  { %7 = vsyncpa [#allocation3], 0  ;;  %v17_v0 = vlaneseq  ;;  %s423_s4 = smov [#allocation2]   ;;  %vm374_vm0 = vcmask 76800   ;;  %s717_s0 = inlined_call_operand.vmem [shape: f32[8,10], index: 0, kind: input, shape index: {}]   ;;  %s718_s1 = inlined_call_operand.vmem [shape: f32[484,10], index: 1, kind: input, shape index: {}]   ;;  %s719_s2 = inlined_call_operand.hbm [shape: f32[4,10], index: 2, kind: output, shape index: {}]  }
   0x1   :  { %v12_v2 = vld [vmem:[%s717_s0] sm:$0xff]  ;;  %v15_v3 = vld [vmem:[%s718_s1 + $0x10] sm:$0xff]  ;;  %v16_v8 = vld [vmem:[%s718_s1 + $0x18] sm:$0xff]  ;;  %s382_s5 = sshll.u32 %s423_s4, 4  ;;  %s383_s5 = int_to_ptr.vmem [resolvable:$true] %s382_s5 }
   0x2   :  { %v18_v1 = vshrl.u32 %v17_v0, 7  ;;  %v25_v9 = vld [vmem:[%s718_s1 + $0x20] sm:$0xff]  ;;  %v26_v10 = vld [vmem:[%s718_s1 + $0x28] sm:$0xff]  ;;  %v35_v17 = vld [vmem:[%s718_s1 + $0x30] sm:$0xff]  ;;  %s399_s6 = scalar_lea.vmem %s383_s5, 64  ;;  %p404_p1 = scmp.lt.s32.totalorder %s383_s5, %s383_s5 }
   0x3   :  { %v13_v12 = vld [vmem:[%s718_s1] sm:$0xff]  ;;  %v14_v16 = vld [vmem:[%s718_s1 + $0x8] sm:$0xff]  ;;  %v36_v18 = vld [vmem:[%s718_s1 + $0x38] sm:$0xff]  ;;  %p400_p0 = scmp.ne.s32.totalorder %s383_s5, %s399_s6  ;;  %p405_p2 = scmp.lt.s32.totalorder %s399_s6, %s399_s6 }
   0x4   :  { %v445_v4 = vsub.s32 0, %v18_v1  ;;  %v447_v5 = vsub.s32 1, %v18_v1  ;;  %v449_v6 = vsub.s32 2, %v18_v1  ;;  %v451_v7 = vsub.s32 3, %v18_v1  ;;  %v45_v25 = vld [vmem:[%s718_s1 + $0x40] sm:$0xff]  ;;  %v46_v26 = vld [vmem:[%s718_s1 + $0x48] sm:$0xff] }
   0x5   :  { %v462_v11 = vsub.s32 4, %v18_v1  ;;  %v480_v20 = vsub.s32 5, %v18_v1  ;;  %v489_v28 = vsub.s32 6, %v18_v1  ;;  %v55_v33 = vld [vmem:[%s718_s1 + $0x50] sm:$0xff]  ;;  %v495_v35 = vsub.s32 7, %v18_v1  ;;  %v56_v40 = vld [vmem:[%s718_s1 + $0x58] sm:$0xff]  ;;  %p406_p3 = por %p405_p2, %p404_p1 }
   0x6   :  { %v20_v13 = vrot.slane %v12_v2, %v445_v4  ;;  %v30_v14 = vrot.slane %v12_v2, %v447_v5  ;;  %v40_v15 = vrot.slane %v12_v2, %v449_v6  ;;  %v50_v19 = vrot.slane %v12_v2, %v451_v7  ;;  %v65_v41 = vld [vmem:[%s718_s1 + $0x60] sm:$0xff]  ;;  %v75_v47 = vld [vmem:[%s718_s1 + $0x70] sm:$0xff]  ;;  %v66_v52 = vld [vmem:[%s718_s1 + $0x68] sm:$0xff] }
   0x7   :  { %v60_v27 = vrot.slane %v12_v2, %v462_v11  ;;  %v70_v34 = vrot.slane %v12_v2, %v480_v20  ;;  %v80_v45 = vrot.slane %v12_v2, %v489_v28  ;;  %v90_v51 = vrot.slane %v12_v2, %v495_v35  ;;  %v85_v53 = vld [vmem:[%s718_s1 + $0x80] sm:$0xff]  ;;  %v76_v60 = vld [vmem:[%s718_s1 + $0x78] sm:$0xff]  ;;  %v86_v1 = vld [vmem:[%s718_s1 + $0x88] sm:$0xff]  ;;  %p407_p4 = pnand %p406_p3, %p400_p0 }
   0x8   :  { %v21_v21 = vmul.f32 %v20_v13, %v15_v3  ;;  %v22_v22 = vmul.f32 %v20_v13, %v16_v8  ;;  %v31_v23 = vmul.f32 %v30_v14, %v25_v9  ;;  %v32_v24 = vmul.f32 %v30_v14, %v26_v10  ;;  %v99_v9 = vld [vmem:[%s718_s1 + $0xa0] sm:$0xff]  ;;  %v109_v13 = vld [vmem:[%s718_s1 + $0xb0] sm:$0xff]  ;;  %v110_v14 = vld [vmem:[%s718_s1 + $0xb8] sm:$0xff] }
   0x9   :  { %v41_v31 = vmul.f32 %v40_v15, %v35_v17  ;;  %v42_v32 = vmul.f32 %v40_v15, %v36_v18  ;;  %v51_v38 = vmul.f32 %v50_v19, %v45_v25  ;;  %v52_v39 = vmul.f32 %v50_v19, %v46_v26  ;;  %v97_v15 = vld [vmem:[%s718_s1 + $0x90] sm:$0xff]  ;;  %v98_v19 = vld [vmem:[%s718_s1 + $0x98] sm:$0xff] }
   0xa   :  { %v23_v29 = vadd.f32 %v21_v21, %v13_v12  ;;  %v24_v30 = vadd.f32 %v22_v22, %v14_v16  ;;  %v61_v44 = vmul.f32 %v60_v27, %v55_v33  ;;  %v62_v46 = vmul.f32 %v60_v27, %v56_v40  ;;  %v100_v12 = vld [vmem:[%s718_s1 + $0xa8] sm:$0xff]  ;;  %v119_v21 = vld [vmem:[%s718_s1 + $0xc0] sm:$0xff] }
   0xb   :  { %v71_v50 = vmul.f32 %v70_v34, %v65_v41  ;;  %v81_v55 = vmul.f32 %v80_v45, %v75_v47  ;;  %v72_v57 = vmul.f32 %v70_v34, %v66_v52  ;;  %v91_v59 = vmul.f32 %v90_v51, %v85_v53  ;;  %v120_v22 = vld [vmem:[%s718_s1 + $0xc8] sm:$0xff] }
   0xc   :  { %v33_v36 = vadd.f32 %v31_v23, %v23_v29  ;;  %v34_v37 = vadd.f32 %v32_v24, %v24_v30  ;;  %v82_v63 = vmul.f32 %v80_v45, %v76_v60  ;;  %v92_v3 = vmul.f32 %v90_v51, %v86_v1  ;;  %v129_v29 = vld [vmem:[%s718_s1 + $0xd0] sm:$0xff]  ;;  %v130_v30 = vld [vmem:[%s718_s1 + $0xd8] sm:$0xff]  ;;  %v159_v51 = vld [vmem:[%s718_s1 + $0x100] sm:$0xff] }
   0xd   :  { %v150_v45 = vld [vmem:[%s718_s1 + $0xf8] sm:$0xff]  ;;  %v160_v53 = vld [vmem:[%s718_s1 + $0x108] sm:$0xff] }
   0xe   :  { %v43_v42 = vadd.f32 %v41_v31, %v33_v36  ;;  %v44_v43 = vadd.f32 %v42_v32, %v34_v37  ;;  %v139_v37 = vld [vmem:[%s718_s1 + $0xe0] sm:$0xff] }
  0x10   :  { %v53_v48 = vadd.f32 %v51_v38, %v43_v42  ;;  %v54_v49 = vadd.f32 %v52_v39, %v44_v43  ;;  %v140_v38 = vld [vmem:[%s718_s1 + $0xe8] sm:$0xff] }
  0x12   :  { %v63_v54 = vadd.f32 %v61_v44, %v53_v48  ;;  %v64_v56 = vadd.f32 %v62_v46, %v54_v49  ;;  %v149_v44 = vld [vmem:[%s718_s1 + $0xf0] sm:$0xff] }
  0x14   :  { %v73_v58 = vadd.f32 %v71_v50, %v63_v54  ;;  %v74_v62 = vadd.f32 %v72_v57, %v64_v56 }
  0x16   :  { %v83_v61 = vadd.f32 %v81_v55, %v73_v58  ;;  %v84_v2 = vadd.f32 %v82_v63, %v74_v62 }
  0x18   :  { %v93_v0 = vadd.f32 %v91_v59, %v83_v61  ;;  %v94_v8 = vadd.f32 %v92_v3, %v84_v2  ;;  %v169_v59 = vld [vmem:[%s718_s1 + $0x110] sm:$0xff]  ;;  %v170_v61 = vld [vmem:[%s718_s1 + $0x118] sm:$0xff]  ;;  %v179_v3 = vld [vmem:[%s718_s1 + $0x120] sm:$0xff] }
  0x1a   :  { %391 = vtanh.f32 %v93_v0 }
  0x1b   :  { %393 = vtanh.f32 %v94_v8  ;;  %v180_v8 = vld [vmem:[%s718_s1 + $0x128] sm:$0xff] }
  0x24   :  { %v392_v10 = vpop.eup %391 }
  0x25   :  { %v104_v16 = vrot.slane %v392_v10, %v445_v4  ;;  %v114_v17 = vrot.slane %v392_v10, %v447_v5  ;;  %v124_v18 = vrot.slane %v392_v10, %v449_v6  ;;  %v134_v23 = vrot.slane %v392_v10, %v451_v7  ;;  %v394_v52 = vpop.eup %393 }
  0x26   :  { %v144_v31 = vrot.slane %v392_v10, %v462_v11  ;;  %v154_v39 = vrot.slane %v392_v10, %v480_v20  ;;  %v164_v46 = vrot.slane %v392_v10, %v489_v28  ;;  %v174_v54 = vrot.slane %v392_v10, %v495_v35 }
  0x27   :  { %v105_v24 = vmul.f32 %v104_v16, %v99_v9  ;;  %v106_v25 = vmul.f32 %v104_v16, %v100_v12  ;;  %v115_v26 = vmul.f32 %v114_v17, %v109_v13  ;;  %v116_v27 = vmul.f32 %v114_v17, %v110_v14  ;;  %v189_v14 = vld [vmem:[%s718_s1 + $0x130] sm:$0xff] }
  0x28   :  { %v125_v34 = vmul.f32 %v124_v18, %v119_v21  ;;  %v126_v36 = vmul.f32 %v124_v18, %v120_v22  ;;  %v135_v42 = vmul.f32 %v134_v23, %v129_v29  ;;  %v136_v43 = vmul.f32 %v134_v23, %v130_v30  ;;  %v199_v22 = vld [vmem:[%s718_s1 + $0x140] sm:$0xff]  ;;  %v200_v23 = vld [vmem:[%s718_s1 + $0x148] sm:$0xff]  ;;  %v209_v30 = vld [vmem:[%s718_s1 + $0x150] sm:$0xff] }
  0x29   :  { %v107_v32 = vadd.f32 %v105_v24, %v97_v15  ;;  %v108_v33 = vadd.f32 %v106_v25, %v98_v19  ;;  %v145_v49 = vmul.f32 %v144_v31, %v139_v37  ;;  %v146_v50 = vmul.f32 %v144_v31, %v140_v38  ;;  %v190_v15 = vld [vmem:[%s718_s1 + $0x138] sm:$0xff]  ;;  %v219_v38 = vld [vmem:[%s718_s1 + $0x160] sm:$0xff] }
  0x2a   :  { %v155_v57 = vmul.f32 %v154_v39, %v149_v44  ;;  %v156_v58 = vmul.f32 %v154_v39, %v150_v45  ;;  %v165_v60 = vmul.f32 %v164_v46, %v159_v51  ;;  %v166_v0 = vmul.f32 %v164_v46, %v160_v53  ;;  %v210_v31 = vld [vmem:[%s718_s1 + $0x158] sm:$0xff]  ;;  %v220_v44 = vld [vmem:[%s718_s1 + $0x168] sm:$0xff]  ;;  %v229_v45 = vld [vmem:[%s718_s1 + $0x170] sm:$0xff] }
  0x2b   :  { %v117_v40 = vadd.f32 %v115_v26, %v107_v32  ;;  %v118_v41 = vadd.f32 %v116_v27, %v108_v33  ;;  %v184_v1 = vrot.slane %v394_v52, %v445_v4  ;;  %v175_v2 = vmul.f32 %v174_v54, %v169_v59  ;;  %v239_v51 = vld [vmem:[%s718_s1 + $0x180] sm:$0xff] }
  0x2c   :  { %v176_v12 = vmul.f32 %v174_v54, %v170_v61  ;;  %v194_v13 = vrot.slane %v394_v52, %v447_v5  ;;  %v204_v16 = vrot.slane %v394_v52, %v449_v6  ;;  %v214_v24 = vrot.slane %v394_v52, %v451_v7 }
  0x2d   :  { %v127_v47 = vadd.f32 %v125_v34, %v117_v40  ;;  %v128_v48 = vadd.f32 %v126_v36, %v118_v41  ;;  %v185_v19 = vmul.f32 %v184_v1, %v179_v3  ;;  %v186_v21 = vmul.f32 %v184_v1, %v180_v8  ;;  %v240_v1 = vld [vmem:[%s718_s1 + $0x188] sm:$0xff] }
  0x2e   :  { %v195_v27 = vmul.f32 %v194_v13, %v189_v14  ;;  %v196_v29 = vmul.f32 %v194_v13, %v190_v15  ;;  %v224_v32 = vrot.slane %v394_v52, %v462_v11  ;;  %v205_v36 = vmul.f32 %v204_v16, %v199_v22  ;;  %v262_v15 = vld [vmem:[%s718_s1 + $0x1a4] sm:$0xf]  ;;  %v276_v22 = vld [vmem:[%s718_s1 + $0x1ac] sm:$0xf] }
  0x2f   :  { %v137_v55 = vadd.f32 %v135_v42, %v127_v47  ;;  %v138_v56 = vadd.f32 %v136_v43, %v128_v48  ;;  %v206_v37 = vmul.f32 %v204_v16, %v200_v23  ;;  %v234_v39 = vrot.slane %v394_v52, %v480_v20  ;;  %v269_v16 = vld [vmem:[%s718_s1 + $0x1a8] sm:$0xf] }
  0x30   :  { %v215_v42 = vmul.f32 %v214_v24, %v209_v30  ;;  %v216_v43 = vmul.f32 %v214_v24, %v210_v31  ;;  %v225_v48 = vmul.f32 %v224_v32, %v219_v38  ;;  %v290_v31 = vld [vmem:[%s718_s1 + $0x1b4] sm:$0xf] }
  0x31   :  { %v147_v62 = vadd.f32 %v145_v49, %v137_v55  ;;  %v148_v63 = vadd.f32 %v146_v50, %v138_v56  ;;  %v244_v49 = vrot.slane %v394_v52, %v489_v28  ;;  %v226_v50 = vmul.f32 %v224_v32, %v220_v44 }
  0x32   :  { %v235_v55 = vmul.f32 %v234_v39, %v229_v45  ;;  %v254_v56 = vrot.slane %v394_v52, %v495_v35  ;;  %v311_v45 = vld [vmem:[%s718_s1 + $0x1c0] sm:$0xf] }
  0x33   :  { %v157_v9 = vadd.f32 %v155_v57, %v147_v62  ;;  %v158_v10 = vadd.f32 %v156_v58, %v148_v63  ;;  %v230_v57 = vld [vmem:[%s718_s1 + $0x178] sm:$0xff]  ;;  %v249_v58 = vld [vmem:[%s718_s1 + $0x190] sm:$0xff]  ;;  %v246_v3 = vmul.f32 %v244_v49, %v240_v1 }
  0x34   :  { %v236_v62 = vmul.f32 %v234_v39, %v230_v57 }
  0x35   :  { %v167_v17 = vadd.f32 %v165_v60, %v157_v9  ;;  %v168_v18 = vadd.f32 %v166_v0, %v158_v10  ;;  %v245_v60 = vmul.f32 %v244_v49, %v239_v51  ;;  %v255_v0 = vmul.f32 %v254_v56, %v249_v58  ;;  %v250_v9 = vld [vmem:[%s718_s1 + $0x198] sm:$0xff]  ;;  %v318_v49 = vld [vmem:[%s718_s1 + $0x1c4] sm:$0xf] }
  0x37   :  { %v177_v25 = vadd.f32 %v175_v2, %v167_v17  ;;  %v178_v26 = vadd.f32 %v176_v12, %v168_v18  ;;  %v256_v12 = vmul.f32 %v254_v56, %v250_v9 }
  0x39   :  { %v187_v33 = vadd.f32 %v185_v19, %v177_v25  ;;  %v188_v34 = vadd.f32 %v186_v21, %v178_v26  ;;  %v261_v21 = vld [vmem:[%s718_s1 + $0x1a0] sm:$0xf]  ;;  %v283_v26 = vld [vmem:[%s718_s1 + $0x1b0] sm:$0xf] }
  0x3b   :  { %v197_v40 = vadd.f32 %v195_v27, %v187_v33  ;;  %v198_v41 = vadd.f32 %v196_v29, %v188_v34 }
  0x3d   :  { %v207_v46 = vadd.f32 %v205_v36, %v197_v40  ;;  %v208_v47 = vadd.f32 %v206_v37, %v198_v41  ;;  %v297_v36 = vld [vmem:[%s718_s1 + $0x1b8] sm:$0xf]  ;;  %v304_v41 = vld [vmem:[%s718_s1 + $0x1bc] sm:$0xf] }
  0x3f   :  { %v217_v53 = vadd.f32 %v215_v42, %v207_v46  ;;  %v218_v54 = vadd.f32 %v216_v43, %v208_v47 }
  0x41   :  { %v227_v59 = vadd.f32 %v225_v48, %v217_v53  ;;  %v228_v61 = vadd.f32 %v226_v50, %v218_v54  ;;  %v325_v54 = vld [vmem:[%s718_s1 + $0x1c8] sm:$0xf] }
  0x43   :  { %v237_v63 = vadd.f32 %v235_v55, %v227_v59  ;;  %v238_v52 = vadd.f32 %v236_v62, %v228_v61 }
  0x45   :  { %v247_v2 = vadd.f32 %v245_v60, %v237_v63  ;;  %v248_v10 = vadd.f32 %v246_v3, %v238_v52 }
  0x47   :  { %v257_v8 = vadd.f32 %v255_v0, %v247_v2  ;;  %v258_v13 = vadd.f32 %v256_v12, %v248_v10 }
  0x49   :  { %395 = vtanh.f32 %v257_v8 }
  0x4a   :  { %397 = vtanh.f32 %v258_v13 }
  0x53   :  { %v396_v14 = vpop.eup %395 }
  0x54   :  { %v266_v17 = vrot.slane %v396_v14, %v445_v4  ;;  %v273_v18 = vrot.slane %v396_v14, %v447_v5  ;;  %v280_v19 = vrot.slane %v396_v14, %v449_v6  ;;  %v287_v25 = vrot.slane %v396_v14, %v451_v7  ;;  %v398_v40 = vpop.eup %397 }
  0x55   :  { %v294_v30 = vrot.slane %v396_v14, %v462_v11  ;;  %v301_v34 = vrot.slane %v396_v14, %v480_v20  ;;  %v308_v39 = vrot.slane %v396_v14, %v489_v28  ;;  %v315_v44 = vrot.slane %v396_v14, %v495_v35 }
  0x56   :  { %v267_v23 = vmul.f32 %v266_v17, %v262_v15  ;;  %v274_v24 = vmul.f32 %v273_v18, %v269_v16  ;;  %v281_v29 = vmul.f32 %v280_v19, %v276_v22  ;;  %v288_v33 = vmul.f32 %v287_v25, %v283_v26 }
  0x57   :  { %v295_v38 = vmul.f32 %v294_v30, %v290_v31  ;;  %v302_v43 = vmul.f32 %v301_v34, %v297_v36  ;;  %v309_v47 = vmul.f32 %v308_v39, %v304_v41  ;;  %v322_v48 = vrot.slane %v398_v40, %v445_v4  ;;  %v332_v4 = vld [vmem:[%s718_s1 + $0x1cc] sm:$0xf] }
  0x58   :  { %v268_v27 = vadd.f32 %v267_v23, %v261_v21  ;;  %v316_v51 = vmul.f32 %v315_v44, %v311_v45  ;;  %v329_v53 = vrot.slane %v398_v40, %v447_v5  ;;  %v336_v57 = vrot.slane %v398_v40, %v449_v6  ;;  %v339_v5 = vld [vmem:[%s718_s1 + $0x1d0] sm:$0xf]  ;;  %v346_v6 = vld [vmem:[%s718_s1 + $0x1d4] sm:$0xf] }
  0x59   :  { %v323_v56 = vmul.f32 %v322_v48, %v318_v49  ;;  %v343_v60 = vrot.slane %v398_v40, %v451_v7  ;;  %v350_v63 = vrot.slane %v398_v40, %v462_v11  ;;  %v357_v2 = vrot.slane %v398_v40, %v480_v20  ;;  %v353_v7 = vld [vmem:[%s718_s1 + $0x1d8] sm:$0xf]  ;;  %v360_v11 = vld [vmem:[%s718_s1 + $0x1dc] sm:$0xf]  ;;  %v367_v20 = vld [vmem:[%s718_s1 + $0x1e0] sm:$0xf] }
  0x5a   :  { %v275_v32 = vadd.f32 %v274_v24, %v268_v27  ;;  %v330_v59 = vmul.f32 %v329_v53, %v325_v54  ;;  %v337_v62 = vmul.f32 %v336_v57, %v332_v4  ;;  %v364_v8 = vrot.slane %v398_v40, %v489_v28 }
  0x5b   :  { %v344_v1 = vmul.f32 %v343_v60, %v339_v5  ;;  %v351_v3 = vmul.f32 %v350_v63, %v346_v6  ;;  %v358_v10 = vmul.f32 %v357_v2, %v353_v7  ;;  %v371_v12 = vrot.slane %v398_v40, %v495_v35 }
  0x5c   :  { %v282_v37 = vadd.f32 %v281_v29, %v275_v32  ;;  %v365_v14 = vmul.f32 %v364_v8, %v360_v11 }
  0x5d   :  { %v372_v16 = vmul.f32 %v371_v12, %v367_v20 }
  0x5e   :  { %v289_v42 = vadd.f32 %v288_v33, %v282_v37 }
  0x60   :  { %v296_v46 = vadd.f32 %v295_v38, %v289_v42 }
  0x62   :  { %v303_v50 = vadd.f32 %v302_v43, %v296_v46 }
  0x64   :  { %v310_v55 = vadd.f32 %v309_v47, %v303_v50 }
  0x66   :  { %v317_v58 = vadd.f32 %v316_v51, %v310_v55 }
  0x68   :  { %v324_v61 = vadd.f32 %v323_v56, %v317_v58 }
  0x6a   :  { %v331_v0 = vadd.f32 %v330_v59, %v324_v61 }
  0x6c   :  { %v338_v52 = vadd.f32 %v337_v62, %v331_v0 }
  0x6e   :  { %v345_v9 = vadd.f32 %v344_v1, %v338_v52 }
  0x70   :  { %v352_v13 = vadd.f32 %v351_v3, %v345_v9 }
  0x72   :  { %v359_v15 = vadd.f32 %v358_v10, %v352_v13 }
  0x74   :  { %v366_v17 = vadd.f32 %v365_v14, %v359_v15 }
  0x76   :  { %v373_v28 = vadd.f32 %v372_v16, %v366_v17 }
  0x78   :  { %375 = vst.msk [vmem:[#allocation2] sm:$0xf] %vm374_vm0, %v373_v28 }
  0x79   :  { %410 = shalt.err (!%p407_p4)
}
  0x7a   :  { %s411_s8 = scalar_lea.hbm %s719_s2, 64 }
  0x7b   :  { %p412_p5 = scmp.ne.s32.totalorder %s719_s2, %s411_s8  ;;  %p415_p6 = scmp.lt.u32.totalorder %s411_s8, %s719_s2 }
  0x7d   :  { %p417_p7 = pnand %p415_p6, %p412_p5 }
  0x7f   :  { %420 = shalt.err (!%p417_p7)
}
  0x80   :  { %385 = dma.vmem_to_hbm [thread:$0]  %s383_s5, 64, %s719_s2, [#allocation3]  }
  0x81   :  { %421 = dma.done.wait [#allocation3], 64  }
  0x82   :  { %422 = vsyncadd [#allocation3], 4294967232 }
  0x83   :  { %389 = vsyncpa [#allocation3], 1 }

</bundles_post_ra>
